<compile_context>
chip_gen: v7x
topology: tpu7x:2x2x1
jax: 0.10.0
libtpu: 0.0.40
codegen_flags: <defaults>
</compile_context>

<pallas_src>
import functools

import jax
import jax.numpy as jnp
from jax.experimental import pallas as pl
from jax.experimental.pallas import tpu as pltpu


# ---------------------------------------------------------------------------
# Kernels
# ---------------------------------------------------------------------------
def _pool_kernel(x_ref, psum_ref):
    """Accumulate f32 partial sums over the lane (S) axis, chunk by chunk.

    x_ref:    (1, C, tS)  current lane chunk of one batch element
    psum_ref: (1, C, 1)   f32 accumulator, resident across the S grid axis
    """
    s = pl.program_id(1)

    @pl.when(s == 0)
    def _init():
        psum_ref[...] = jnp.zeros_like(psum_ref)

    psum_ref[...] += jnp.sum(
        x_ref[...].astype(jnp.float32), axis=-1, keepdims=True)


def _scale_kernel(g_ref, x_ref, o_ref):
    """out = x * gate; gate (sublane-resident) broadcasts over the lane axis.

    g_ref:        (1, C, 1) gate already cast to x.dtype
    x_ref, o_ref: (1, C, tS)
    """
    o_ref[...] = x_ref[...] * g_ref[...]


# ---------------------------------------------------------------------------
# Wrapper
# ---------------------------------------------------------------------------
def _pick_tile_s(S, C, itemsize, max_tile_s, vmem_budget_bytes=12 * 1024 * 1024):
    """Largest lane-dense (multiple of 128) tile dividing S that fits VMEM.

    Peak VMEM for the scale kernel ~ (in + out) x double-buffer
    = 4 * C * tS * itemsize; budget keeps it under the v5e 16 MiB scoped limit.
    """
    cap = max(128, vmem_budget_bytes // (4 * C * itemsize))
    cap = min(cap, max_tile_s)
    ts = (cap // 128) * 128
    while ts >= 128:
        if S % ts == 0:
            return ts
        ts -= 128
    return S  # full-extent block is always legal


def se_layer(x, w1, w2, *, max_tile_s=2048):
    """x: (B, C, H, W, T); w1: (C//r, C); w2: (C, C//r)."""
    B, C, H, W, T = x.shape
    S = H * W * T
    x3 = x.reshape(B, C, S)
    itemsize = jnp.dtype(x.dtype).itemsize
    tS = _pick_tile_s(S, C, itemsize, max_tile_s)
    n_s = S // tS

    # ---- squeeze: tiled f32 sum over S (reduction axis last, "arbitrary") --
    psum = pl.pallas_call(
        _pool_kernel,
        out_shape=jax.ShapeDtypeStruct((B, C, 1), jnp.float32),
        grid_spec=pltpu.PrefetchScalarGridSpec(
            num_scalar_prefetch=0,
            grid=(B, n_s),
            in_specs=[pl.BlockSpec((1, C, tS), lambda b, s: (b, 0, s))],
            out_specs=pl.BlockSpec((1, C, 1), lambda b, s: (b, 0, 0)),
        ),
        compiler_params=pltpu.CompilerParams(
            dimension_semantics=("parallel", "arbitrary")),
        cost_estimate=pl.CostEstimate(
            flops=B * C * S,
            transcendentals=0,
            bytes_accessed=B * C * S * itemsize + B * C * 4),
    )(x3)

    # ---- excite: tiny batched MLP in plain XLA (off the critical path) -----
    pooled = psum[:, :, 0] * (1.0 / float(S))                    # (B, C) f32
    h = jnp.maximum(pooled @ w1.astype(jnp.float32).T, 0.0)      # (B, Cr)
    gate = jax.nn.sigmoid(h @ w2.astype(jnp.float32).T)          # (B, C) f32
    gate = gate.astype(x.dtype).reshape(B, C, 1)                 # cast once

    # ---- scale: lane-dense broadcast multiply in the input dtype -----------
    out3 = pl.pallas_call(
        _scale_kernel,
        out_shape=jax.ShapeDtypeStruct((B, C, S), x.dtype),
        grid_spec=pltpu.PrefetchScalarGridSpec(
            num_scalar_prefetch=0,
            grid=(B, n_s),
            in_specs=[
                pl.BlockSpec((1, C, 1), lambda b, s: (b, 0, 0)),   # gate
                pl.BlockSpec((1, C, tS), lambda b, s: (b, 0, s)),  # x chunk
            ],
            out_specs=pl.BlockSpec((1, C, tS), lambda b, s: (b, 0, s)),
        ),
        compiler_params=pltpu.CompilerParams(
            dimension_semantics=("parallel", "parallel")),
        cost_estimate=pl.CostEstimate(
            flops=B * C * S,
            transcendentals=0,
            bytes_accessed=2 * B * C * S * itemsize + B * C * itemsize),
    )(gate, x3)

    return out3.reshape(B, C, H, W, T)


if __name__ == "__main__":
    # SELayer(channel=16, reduction=2) at small shapes; S = H*W*T = 1024 and
    # max_tile_s=256 so the lane-tiled accumulation path (4 chunks per batch
    # element) is actually exercised.
    B, C, H, W, T = 2, 16, 8, 8, 16
    reduction = 2
    Cr = C // reduction

    key = jax.random.PRNGKey(0)
    kx, k1, k2 = jax.random.split(key, 3)
    x = jax.random.normal(kx, (B, C, H, W, T), dtype=jnp.float32)
    # nn.Linear weight shapes: (out_features, in_features), no bias.
    w1 = jax.random.normal(k1, (Cr, C), dtype=jnp.float32) * 0.1
    w2 = jax.random.normal(k2, (C, Cr), dtype=jnp.float32) * 0.1

    se_fn = jax.jit(functools.partial(se_layer, max_tile_s=256))
    out = se_fn(x, w1, w2)
    jax.block_until_ready(out)

    # Pure-JAX reference check.
    pooled = jnp.mean(x, axis=(2, 3, 4))                        # (B, C)
    y = jax.nn.sigmoid(jnp.maximum(pooled @ w1.T, 0.0) @ w2.T)
    ref = x * y[:, :, None, None, None]
    assert jnp.allclose(out, ref, atol=1e-5, rtol=1e-5), "mismatch vs reference"

    print("KERNEL_OK")
</pallas_src>

<mosaic_0001>
module attributes {stable_mosaic.version = 11 : i64} {
  func.func @_pool_kernel(%arg0: i32, %arg1: i32, %arg2: memref<1x16x256xf32, #tpu.memory_space<vmem>>, %arg3: memref<1x16x1xf32, #tpu.memory_space<vmem>>) attributes {dimension_semantics = [#tpu.dimension_semantics<parallel>, #tpu.dimension_semantics<arbitrary>], iteration_bounds = array<i64: 2, 4>, scalar_prefetch = 0 : i64, scratch_operands = 0 : i64, tpu.core_type = #tpu.core_type<tc>, window_params = [{transform_indices = @transform_0, window_bounds = array<i64: 1, 16, 256>}, {transform_indices = @transform_1, window_bounds = array<i64: 1, 16, 1>}]} {
    %c0_i32 = arith.constant 0 : i32
    %0 = arith.cmpi eq, %arg1, %c0_i32 : i32
    %1 = arith.extui %0 : i1 to i32
    %c0_i32_0 = arith.constant 0 : i32
    %2 = arith.cmpi ne, %1, %c0_i32_0 : i32
    scf.if %2 {
      %cst_9 = arith.constant 0.000000e+00 : f32
      %9 = vector.broadcast %cst_9 : f32 to vector<1x16x1xf32>
      %c0_10 = arith.constant 0 : index
      %c0_11 = arith.constant 0 : index
      %c0_12 = arith.constant 0 : index
      %10 = vector.load %arg3[%c0_10, %c0_11, %c0_12] : memref<1x16x1xf32, #tpu.memory_space<vmem>>, vector<1x16x1xf32>
      tpu.vector_store %arg3[%c0_10, %c0_11, %c0_12], %9 {strides = array<i32>} : memref<1x16x1xf32, #tpu.memory_space<vmem>>, vector<1x16x1xf32>,
    } else {
    }
    %c0 = arith.constant 0 : index
    %c0_1 = arith.constant 0 : index
    %c0_2 = arith.constant 0 : index
    %3 = vector.load %arg3[%c0, %c0_1, %c0_2] : memref<1x16x1xf32, #tpu.memory_space<vmem>>, vector<1x16x1xf32>
    %c0_3 = arith.constant 0 : index
    %c0_4 = arith.constant 0 : index
    %c0_5 = arith.constant 0 : index
    %4 = vector.load %arg2[%c0_3, %c0_4, %c0_5] : memref<1x16x256xf32, #tpu.memory_space<vmem>>, vector<1x16x256xf32>
    %cst = arith.constant dense<0.000000e+00> : vector<1x16xf32>
    %5 = vector.multi_reduction <add>, %4, %cst [2] : vector<1x16x256xf32> to vector<1x16xf32>
    %6 = vector.shape_cast %5 : vector<1x16xf32> to vector<1x16x1xf32>
    %7 = arith.addf %3, %6 : vector<1x16x1xf32>
    %c0_6 = arith.constant 0 : index
    %c0_7 = arith.constant 0 : index
    %c0_8 = arith.constant 0 : index
    %8 = vector.load %arg3[%c0_6, %c0_7, %c0_8] : memref<1x16x1xf32, #tpu.memory_space<vmem>>, vector<1x16x1xf32>
    tpu.vector_store %arg3[%c0_6, %c0_7, %c0_8], %7 {strides = array<i32>} : memref<1x16x1xf32, #tpu.memory_space<vmem>>, vector<1x16x1xf32>,
    return
  }
  func.func @transform_0(%arg0: i32, %arg1: i32) -> (i32, i32, i32) {
    %c0_i32 = arith.constant 0 : i32
    %c0_i32_0 = arith.constant 0 : i32
    return %arg0, %c0_i32, %arg1 : i32, i32, i32
  }
  func.func @transform_1(%arg0: i32, %arg1: i32) -> (i32, i32, i32) {
    %c0_i32 = arith.constant 0 : i32
    %c0_i32_0 = arith.constant 0 : i32
    %c0_i32_1 = arith.constant 0 : i32
    return %arg0, %c0_i32, %c0_i32_0 : i32, i32, i32
  }
}

module attributes {stable_mosaic.version = 11 : i64} {
  func.func @_scale_kernel(%arg0: i32, %arg1: i32, %arg2: memref<1x16x1xf32, #tpu.memory_space<vmem>>, %arg3: memref<1x16x256xf32, #tpu.memory_space<vmem>>, %arg4: memref<1x16x256xf32, #tpu.memory_space<vmem>>) attributes {dimension_semantics = [#tpu.dimension_semantics<parallel>, #tpu.dimension_semantics<parallel>], iteration_bounds = array<i64: 2, 4>, scalar_prefetch = 0 : i64, scratch_operands = 0 : i64, tpu.core_type = #tpu.core_type<tc>, window_params = [{transform_indices = @transform_0, window_bounds = array<i64: 1, 16, 1>}, {transform_indices = @transform_1, window_bounds = array<i64: 1, 16, 256>}, {transform_indices = @transform_2, window_bounds = array<i64: 1, 16, 256>}]} {
    %c0 = arith.constant 0 : index
    %c0_0 = arith.constant 0 : index
    %c0_1 = arith.constant 0 : index
    %0 = vector.load %arg3[%c0, %c0_0, %c0_1] : memref<1x16x256xf32, #tpu.memory_space<vmem>>, vector<1x16x256xf32>
    %c0_2 = arith.constant 0 : index
    %c0_3 = arith.constant 0 : index
    %c0_4 = arith.constant 0 : index
    %1 = vector.load %arg2[%c0_2, %c0_3, %c0_4] : memref<1x16x1xf32, #tpu.memory_space<vmem>>, vector<1x16x1xf32>
    %2 = vector.broadcast %1 : vector<1x16x1xf32> to vector<1x16x256xf32>
    %3 = arith.mulf %0, %2 : vector<1x16x256xf32>
    %c0_5 = arith.constant 0 : index
    %c0_6 = arith.constant 0 : index
    %c0_7 = arith.constant 0 : index
    %4 = vector.load %arg4[%c0_5, %c0_6, %c0_7] : memref<1x16x256xf32, #tpu.memory_space<vmem>>, vector<1x16x256xf32>
    tpu.vector_store %arg4[%c0_5, %c0_6, %c0_7], %3 {strides = array<i32>} : memref<1x16x256xf32, #tpu.memory_space<vmem>>, vector<1x16x256xf32>,
    return
  }
  func.func @transform_0(%arg0: i32, %arg1: i32) -> (i32, i32, i32) {
    %c0_i32 = arith.constant 0 : i32
    %c0_i32_0 = arith.constant 0 : i32
    %c0_i32_1 = arith.constant 0 : i32
    return %arg0, %c0_i32, %c0_i32_0 : i32, i32, i32
  }
  func.func @transform_1(%arg0: i32, %arg1: i32) -> (i32, i32, i32) {
    %c0_i32 = arith.constant 0 : i32
    %c0_i32_0 = arith.constant 0 : i32
    return %arg0, %c0_i32, %arg1 : i32, i32, i32
  }
  func.func @transform_2(%arg0: i32, %arg1: i32) -> (i32, i32, i32) {
    %c0_i32 = arith.constant 0 : i32
    %c0_i32_0 = arith.constant 0 : i32
    return %arg0, %c0_i32, %arg1 : i32, i32, i32
  }
}

</mosaic_0001>

<bundles_post_ra>
// kernel: se_layer.2
= control target key start
LH: loop header
LB: loop body
LE: loop exit
PB: predicated region body
PF: predicated region fallthrough
CT: control target
= control target key end

     0   :  { %s399_s6 = smov 0   ;;  %s401_s7 = smov 0   ;;  %s489_s0 = inlined_call_operand.vmem [shape: f32[2,16,1024], index: 0, kind: input, shape index: {}]   ;;  %s490_s1 = inlined_call_operand.vmem [shape: f32[2,16,1], index: 1, kind: output, shape index: {}]  }
   0x1   :  { %s403_s8 = smov 0   ;;  %s405_s9 = smov 0  }
   0x2   :  { %s407_s10 = smov 0   ;;  %s409_s11 = smov 0  }
   0x3   :  { %s411_s12 = smov 0  }
   0x4 LB: > { %s20_s13 = sadd.s32 1, %s378_s10  ;;  %s23_s14 = sadd.s32 1, %s382_s11  ;;  %s386_s12 = sphi %s411_s12, %s11_s12   ;;  %s382_s11 = sphi %s409_s11, %s496_s11   ;;  %s378_s10 = sphi %s407_s10, %s495_s10   ;;  %s374_s9 = sphi %s405_s9, %s494_s9   ;;  %s370_s8 = sphi %s403_s8, %s493_s8   ;;  %s366_s7 = sphi %s401_s7, %s492_s7   ;;  %s362_s6 = sphi %s399_s6, %s491_s6  }
   0x5   : > { %p21_p0 = scmp.ge.s32.totalorder %s20_s13, 4  ;;  %p39_p1 = scmp.ne.s32.totalorder %s366_s7, %s362_s6 }
   0x6   : > { %p40_p2 = scmp.eq.s32.totalorder %s386_s12, 0  ;;  %s32_s18 = sadd.s32 1, %s366_s7 }
   0x7   : > { %s498_s13 = smov (%p21_p0, %s20_s13), 0  ;;  %s500_s14 = smov (!%p21_p0, %s23_s14), %s382_s11 }
   0x8   : > { %p41_p3 = por %p40_p2, %p39_p1  ;;  %p25_p4 = scmp.ge.s32.totalorder %s500_s14, 2 }
   0x9   : > { %s28_s15 = ssub.s32 %s378_s10, %s498_s13  ;;  %p262_p6 = scmp.ge.s32.totalorder %s386_s12, 8 }
   0xa   : > { %s502_s14 = smov (%p25_p4, %s500_s14), 0 }
   0xb   : > { %s27_s16 = ssub.s32 %s382_s11, %s502_s14  ;;  %91 = sbr.rel (%p262_p6) target bundleno = 27 (0x1b), region = 16 }
   0xc   : > { %s29_s17 = sor.u32 %s28_s15, %s27_s16 }
   0xd   : > { %p30_p5 = scmp.eq.s32.totalorder %s29_s17, 0 }
   0xf   : > { %s450_s19 = scalar_select %p30_p5, %s366_s7, %s32_s18  }
  0x12   : > { %94 = sbr.rel (!%p41_p3) target bundleno = 27 (0x1b), region = 20  ;;  %s96_s20 = sand.u32 (%p41_p3), 1, %s366_s7  }
  0x13   : > { %s264_s21 = sshll.u32 (%p41_p3), %s378_s10, 1  ;;  %s263_s22 = sshll.u32 (%p41_p3), %s96_s20, 5 }
  0x14   : > { %s265_s23 = sshll.u32 (%p41_p3), %s382_s11, 4  ;;  %s98_s29 = scalar_lea.vmem (%p41_p3), [#allocation2], %s263_s22 }
  0x15   : > { %s101_s24 = sadd.s32 (%p41_p3), %s265_s23, %s264_s21 }
  0x16   : > { %s266_s25 = sshll.u32 (%p41_p3), %s101_s24, 3 }
  0x17   : > { %s103_s28 = scalar_lea.vmem (%p41_p3), %s489_s0, %s266_s25 }
  0x18   : > { %v116_v0 = vld [vmem:[%s103_s28] sm:$0xff] (%p41_p3)  ;;  %v118_v1 = vld [vmem:[%s103_s28 + $0x8] sm:$0xff] (%p41_p3) }
  0x19   : > { %v120_v2 = vld [vmem:[%s103_s28 + $0x40] sm:$0xff]  ;;  %117 = vst [vmem:[%s98_s29] sm:$0xff] %v116_v0  ;;  %119 = vst [vmem:[%s98_s29 + $0x8] sm:$0xff] %v118_v1  ;;  %v122_v3 = vld [vmem:[%s103_s28 + $0x48] sm:$0xff] }
  0x1a   : > { %121 = vst [vmem:[%s98_s29 + $0x10] sm:$0xff] %v120_v2  ;;  %123 = vst [vmem:[%s98_s29 + $0x18] sm:$0xff] %v122_v3 }
  0x1b PF: > { %p267_p7 = scmp.ge.s32.totalorder %s386_s12, 1  ;;  %p128_p8 = scmp.lt.s32.totalorder %s386_s12, 9 }
  0x1d   : > { %p129_p9 = pnand %p267_p7, %p128_p8 }
  0x1e   : > { %s135_s30 = sand.u32 (!%p129_p9), 1, %s362_s6   ;;  %p155_p10 = scmp.lt.s32.totalorder (!%p129_p9), %s374_s9, 1 }
  0x1f   : > { %132 = sbr.rel (%p129_p9) target bundleno = 197 (0xc5), region = 43  ;;  %s268_s2 = sshll.u32 (!%p129_p9), %s135_s30, 5 }
  0x20   : > { %s137_s16 = scalar_lea.vmem (!%p129_p9), [#allocation2], %s268_s2  ;;  %p271_p11 = scmp.ne.s32.totalorder (!%p129_p9), %s370_s8, 0 }
  0x26   : > { %s504_s9 = smov (!%p155_p10, %s374_s9), 1  ;;  %163 = sbr.rel (%p271_p11) target bundleno = 45 (0x2d), region = 51 }
  0x27   : > { %s274_s3 = sshll.u32 %s504_s9, 4  ;;  %vm164_vm0 = vcmask (!%p271_p11), 7168   ;;  %v388_v4 = vmov (!%p271_p11), 0.0  }
  0x28   : > { %s159_s15 = scalar_lea.vmem %s490_s1, %s274_s3 }
  0x29   : > { %165 = vst.msk [vmem:[%s159_s15] sm:$0xff] (!%p271_p11), %vm164_vm0, %v388_v4  ;;  %166 = vst.msk [vmem:[%s159_s15 + $0x8] sm:$0xff] (!%p271_p11), %vm164_vm0, %v388_v4 }
  0x2d PF: > { %v169_v5 = vld [vmem:[%s137_s16] sm:$0xff]  ;;  %v170_v6 = vld [vmem:[%s137_s16 + $0x8] sm:$0xff]  ;;  %v171_v7 = vld [vmem:[%s137_s16 + $0x10] sm:$0xff]  ;;  %vm181_vm1 = vcmask 7168  }
  0x2e   : > { %v173_v8 = vadd.f32 %v170_v6, %v169_v5  ;;  %v172_v9 = vld [vmem:[%s137_s16 + $0x18] sm:$0xff] }
  0x2f   : > { %v176_v10 = vadd.f32 %v172_v9, %v171_v7 }
  0x30   : > { %174 = vadd.xlane.f32.xlu0 %v173_v8  ;;  %v167_v11 = vld [vmem:[%s159_s15] sm:$0xff]  ;;  %v168_v14 = vld [vmem:[%s159_s15 + $0x8] sm:$0xff] }
  0x34   : > { %177 = vadd.xlane.f32.xlu0 %v176_v10 }
  0xbd   : > { %v175_v12 = vpop.xlane.xlu0 %174 }
  0xbe   : > { %v179_v13 = vadd.f32 %v175_v12, %v167_v11 }
  0xc0   : > { %182 = vst.msk [vmem:[%s159_s15] sm:$0xff] %vm181_vm1, %v179_v13 }
  0xc1   : > { %v178_v15 = vpop.xlane.xlu0 %177 }
  0xc2   : > { %v180_v16 = vadd.f32 %v178_v15, %v168_v14 }
  0xc4   : > { %183 = vst.msk [vmem:[%s159_s15 + $0x8] sm:$0xff] %vm181_vm1, %v180_v16 }
  0xc5 PF: > { %s11_s12 = sadd.s32 1, %s386_s12   ;;  %s491_s6 = smov %s366_s7 }
  0xc6   : > { %p8_p12 = scmp.ge.s32.totalorder %s11_s12, 10   ;;  %s492_s7 = smov %s450_s19 }
  0xc7   : > { %s493_s8 = smov %s378_s10  ;;  %s494_s9 = smov %s382_s11 }
  0xc8   : > { %s495_s10 = smov %s498_s13  ;;  %s496_s11 = smov %s502_s14 }
  0xc9   :  { %10 = sbr.rel (!%p8_p12) target bundleno = 4 (0x4), region = 86 }

// kernel: se_layer.3
= control target key start
LH: loop header
LB: loop body
LE: loop exit
PB: predicated region body
PF: predicated region fallthrough
CT: control target
= control target key end

     0   :  { %s499_s9 = smov 0   ;;  %s501_s10 = smov 0   ;;  %s600_s0 = inlined_call_operand.vmem [shape: f32[2,16,1], index: 0, kind: input, shape index: {}]   ;;  %s601_s1 = inlined_call_operand.vmem [shape: f32[2,16,1024], index: 1, kind: input, shape index: {}]   ;;  %s602_s2 = inlined_call_operand.vmem [shape: f32[2,16,1024], index: 2, kind: output, shape index: {}]  }
   0x1   :  { %s503_s11 = smov 0   ;;  %s505_s12 = smov 0  }
   0x2   :  { %s507_s13 = smov 0   ;;  %s509_s14 = smov 0  }
   0x3   :  { %s511_s15 = smov 0  }
   0x4 LB: > { %s21_s16 = sadd.s32 1, %s473_s13  ;;  %s24_s17 = sadd.s32 1, %s477_s14  ;;  %s481_s15 = sphi %s511_s15, %s12_s15   ;;  %s477_s14 = sphi %s509_s14, %s609_s14   ;;  %s473_s13 = sphi %s507_s13, %s608_s13   ;;  %s469_s12 = sphi %s505_s12, %s607_s12   ;;  %s465_s11 = sphi %s503_s11, %s606_s11   ;;  %s461_s10 = sphi %s501_s10, %s605_s10   ;;  %s457_s9 = sphi %s499_s9, %s604_s9  }
   0x5   : > { %p22_p0 = scmp.ge.s32.totalorder %s21_s16, 4  ;;  %s349_s18 = sadd.s32 4294967295, %s481_s15  }
   0x6   : > { %p66_p1 = scmp.ne.s32.totalorder %s461_s10, %s457_s9  ;;  %p67_p2 = scmp.eq.s32.totalorder %s481_s15, 0 }
   0x7   : > { %s611_s16 = smov (%p22_p0, %s21_s16), 0  ;;  %s613_s17 = smov (!%p22_p0, %s24_s17), %s477_s14 }
   0x8   : > { %p26_p3 = scmp.ge.s32.totalorder %s613_s17, 2  ;;  %p98_p4 = scmp.eq.s32.totalorder %s349_s18, 7 }
   0x9   : > { %s55_s19 = ssub.s32 %s473_s13, %s611_s16  ;;  %p68_p5 = por %p67_p2, %p66_p1 }
   0xa   : > { %s615_s17 = smov (%p26_p3, %s613_s17), 0  ;;  %p547_p6 = por %p98_p4, %p66_p1 }
   0xb   : > { %s54_s21 = ssub.s32 %s477_s14, %s615_s17  ;;  %s59_s23 = sadd.s32 1, %s461_s10 }
   0xc   : > { %s56_s22 = sor.u32 %s55_s19, %s54_s21  ;;  %p352_p8 = scmp.ge.s32.totalorder %s481_s15, 8 }
   0xd   : > { %p57_p7 = scmp.eq.s32.totalorder %s56_s22, 0 }
   0xe   : > { %120 = sbr.rel (%p352_p8) target bundleno = 30 (0x1e), region = 16 }
   0xf   : > { %s555_s24 = scalar_select %p57_p7, %s461_s10, %s59_s23  }
  0x15   : > { %131 = sbr.rel (!%p68_p5) target bundleno = 30 (0x1e), region = 24  ;;  %s133_s25 = sand.u32 (%p68_p5), 1, %s461_s10  }
  0x16   : > { %s354_s26 = sshll.u32 (%p68_p5), %s473_s13, 1  ;;  %s353_s27 = sshll.u32 (%p68_p5), %s133_s25, 5 }
  0x17   : > { %s355_s28 = sshll.u32 (%p68_p5), %s477_s14, 4  ;;  %s135_s6 = scalar_lea.vmem (%p68_p5), [#allocation2], %s353_s27 }
  0x18   : > { %s138_s29 = sadd.s32 (%p68_p5), %s355_s28, %s354_s26 }
  0x19   : > { %s356_s30 = sshll.u32 (%p68_p5), %s138_s29, 3 }
  0x1a   : > { %s140_s5 = scalar_lea.vmem (%p68_p5), %s601_s1, %s356_s30 }
  0x1b   : > { %v153_v0 = vld [vmem:[%s140_s5] sm:$0xff] (%p68_p5)  ;;  %v155_v1 = vld [vmem:[%s140_s5 + $0x8] sm:$0xff] (%p68_p5) }
  0x1c   : > { %v157_v2 = vld [vmem:[%s140_s5 + $0x40] sm:$0xff]  ;;  %154 = vst [vmem:[%s135_s6] sm:$0xff] %v153_v0  ;;  %156 = vst [vmem:[%s135_s6 + $0x8] sm:$0xff] %v155_v1  ;;  %v159_v3 = vld [vmem:[%s140_s5 + $0x48] sm:$0xff] }
  0x1d   : > { %158 = vst [vmem:[%s135_s6 + $0x10] sm:$0xff] %v157_v2  ;;  %160 = vst [vmem:[%s135_s6 + $0x18] sm:$0xff] %v159_v3 }
  0x1e PF: > { %p357_p9 = scmp.ge.s32.totalorder %s481_s15, 1  ;;  %p165_p10 = scmp.lt.s32.totalorder %s481_s15, 9 }
  0x20   : > { %p166_p11 = pnand %p357_p9, %p165_p10 }
  0x21   : > { %p197_p12 = scmp.lt.s32.totalorder (!%p166_p11), %s469_s12, 1  ;;  %v483_v4 = vmov (!%p166_p11), 0   ;;  %s172_s22 = sand.u32 (!%p166_p11), 1, %s457_s9  }
  0x22   : > { %169 = sbr.rel (%p166_p11) target bundleno = 189 (0xbd), region = 47  ;;  %426 = vset.pattern.permute.xlu0 (!%p166_p11), %v483_v4  ;;  %s358_s23 = sshll.u32 (!%p166_p11), %s172_s22, 5 }
  0x23   : > { %s174_s25 = scalar_lea.vmem (!%p166_p11), [#allocation2], %s358_s23  ;;  %s196_s26 = scalar_lea.vmem (!%p166_p11), [#allocation3], %s358_s23 }
  0x24   : > { %v204_v7 = vld [vmem:[%s174_s25] sm:$0xff] (!%p166_p11)  ;;  %v205_v8 = vld [vmem:[%s174_s25 + $0x8] sm:$0xff] (!%p166_p11)  ;;  %v206_v12 = vld [vmem:[%s174_s25 + $0x10] sm:$0xff] (!%p166_p11) }
  0x25   : > { %v207_v13 = vld [vmem:[%s174_s25 + $0x18] sm:$0xff] (!%p166_p11) }
  0x29   : > { %s198_s7 = scalar_select %p197_p12, %s469_s12, 1 }
  0x2a   : > { %s363_s9 = sshll.u32 (%p547_p6), %s465_s11, 1  ;;  %s364_s27 = sshll.u32 (%p547_p6), %s469_s12, 4 }
  0x2b   : > { %s368_s8 = sshll.u32 %s198_s7, 4  ;;  %s237_s28 = sadd.s32 (%p547_p6), %s364_s27, %s363_s9 }
  0x2c   : > { %s201_s21 = scalar_lea.vmem %s600_s0, %s368_s8  ;;  %s365_s29 = sshll.u32 (%p547_p6), %s237_s28, 3 }
  0x2d   : > { %v208_v5 = vld [vmem:[%s201_s21] sm:$0xff]  ;;  %v209_v6 = vld [vmem:[%s201_s21 + $0x8] sm:$0xff]  ;;  %s239_s4 = scalar_lea.vmem (%p547_p6), %s602_s2, %s365_s29 }
  0x2e   : > { %212 = vperm.xlu0 %426, %v208_v5  }
  0x32   : > { %217 = vperm.xlu0 %426, %v209_v6  }
  0xad   : > { %v213_v9 = vpop.permute.xlu0 %212 }
  0xae   : > { %v220_v10 = vmul.f32 %v213_v9, %v204_v7  ;;  %v221_v11 = vmul.f32 %v213_v9, %v205_v8  ;;  %234 = sbr.rel (!%p547_p6) target bundleno = 189 (0xbd), region = 55 }
  0xb0   : > { %224 = vst [vmem:[%s196_s26] sm:$0xff] %v220_v10  ;;  %225 = vst [vmem:[%s196_s26 + $0x8] sm:$0xff] %v221_v11 }
  0xb1   : > { %v218_v14 = vpop.permute.xlu0 %217 }
  0xb2   : > { %v222_v15 = vmul.f32 %v218_v14, %v206_v12  ;;  %v223_v16 = vmul.f32 %v218_v14, %v207_v13 }
  0xb4   : > { %226 = vst [vmem:[%s196_s26 + $0x10] sm:$0xff] %v222_v15  ;;  %227 = vst [vmem:[%s196_s26 + $0x18] sm:$0xff] %v223_v16 }
  0xb7   : > { %v252_v17 = vld [vmem:[%s196_s26] sm:$0xff]  ;;  %v254_v18 = vld [vmem:[%s196_s26 + $0x8] sm:$0xff] }
  0xb8   : > { %253 = vst [vmem:[%s239_s4] sm:$0xff] %v252_v17  ;;  %255 = vst [vmem:[%s239_s4 + $0x8] sm:$0xff] %v254_v18 }
  0xbb   : > { %v256_v19 = vld [vmem:[%s196_s26 + $0x10] sm:$0xff]  ;;  %v258_v20 = vld [vmem:[%s196_s26 + $0x18] sm:$0xff] }
  0xbc   : > { %257 = vst [vmem:[%s239_s4 + $0x40] sm:$0xff] %v256_v19  ;;  %259 = vst [vmem:[%s239_s4 + $0x48] sm:$0xff] %v258_v20 }
  0xbd PF: > { %s12_s15 = sadd.s32 1, %s481_s15   ;;  %s604_s9 = smov %s461_s10 }
  0xbe   : > { %p9_p13 = scmp.ge.s32.totalorder %s12_s15, 10   ;;  %s605_s10 = smov %s555_s24 }
  0xbf   : > { %s606_s11 = smov %s473_s13  ;;  %s607_s12 = smov %s477_s14 }
  0xc0   : > { %s608_s13 = smov %s611_s16  ;;  %s609_s14 = smov %s615_s17 }
  0xc1   :  { %11 = sbr.rel (!%p9_p13) target bundleno = 4 (0x4), region = 112 }

</bundles_post_ra>
